<compile_context>
chip_gen: v5e
topology: v5e:2x2
jax: 0.10.0
libtpu: 0.0.40
codegen_flags: <defaults>
</compile_context>

<pallas_src>
import jax
import jax.numpy as jnp
from jax.experimental import pallas as pl
from jax.experimental.pallas import tpu as pltpu


def _round_up(x, m):
    return (x + m - 1) // m * m


def rnncell2_kernel(alpha_ref, xk_ref, w_ref, b_ref, out_ref):
    # Single fused MXU contraction; accumulate in f32.
    h = jnp.dot(xk_ref[...], w_ref[...], preferred_element_type=jnp.float32)
    h = h + b_ref[...]                     # bias kept in f32, broadcast over batch
    a = alpha_ref[0]
    # Gated nonlinearity in f32 (keep EUP-only transcendentals, no bf16 epilogue).
    out_ref[...] = ((1.0 - jnp.exp(-a * h)) * jnp.tanh(h)).astype(out_ref.dtype)


def prepare_params(U_w, U_b, V_w, *, compute_dtype=jnp.float32):
    """One-time parameter prep (hoisted out of the per-step forward):
    transpose, stack [Uᵀ;Vᵀ], and pad to lane/sublane-dense shapes."""
    hid, inp = U_w.shape
    Hp = _round_up(hid, 128)

    # Fused weight for the explicit-hidden path: (inp+hid, hid) -> (Kp, Hp)
    K_full = inp + hid
    Kp_full = _round_up(K_full, 128)
    W_full = jnp.concatenate([U_w.T, V_w.T], axis=0).astype(jnp.float32)
    W_full = jnp.pad(W_full, ((0, Kp_full - K_full), (0, Hp - hid)))
    W_full = W_full.astype(compute_dtype)

    # U-only weight for the hidden=None fast path (V is skipped entirely).
    Kp_x = _round_up(inp, 128)
    W_x = jnp.pad(U_w.T.astype(jnp.float32), ((0, Kp_x - inp), (0, Hp - hid)))
    W_x = W_x.astype(compute_dtype)

    bias = jnp.pad(U_b.astype(jnp.float32).reshape(1, hid), ((0, 0), (0, Hp - hid)))

    return dict(W_full=W_full, W_x=W_x, bias=bias,
                inp=inp, hid=hid, Hp=Hp, Kp_full=Kp_full, Kp_x=Kp_x,
                compute_dtype=compute_dtype)


def rnncell2_forward(params, x, alpha, i=1, hidden=None):
    """x: (B, inp)  alpha: (slen,)  hidden: (B, hid) or None."""
    B, inp = x.shape
    hid, Hp = params["hid"], params["Hp"]
    cdt = params["compute_dtype"]
    Bp = _round_up(max(B, 8), 8)

    if hidden is None:
        # Fast path: hidden == 0, so V @ hidden contributes nothing — skip it.
        Kp = params["Kp_x"]
        xk = jnp.pad(x.astype(jnp.float32), ((0, Bp - B), (0, Kp - inp)))
        W = params["W_x"]
    else:
        # Fused single contraction: [x, hidden] @ [Uᵀ ; Vᵀ]
        # (an input_output_alias on hidden is superseded by this fusion)
        Kp = params["Kp_full"]
        xk = jnp.concatenate(
            [x.astype(jnp.float32), hidden.astype(jnp.float32)], axis=1)
        xk = jnp.pad(xk, ((0, Bp - B), (0, Kp - (inp + hid))))
        W = params["W_full"]
    xk = xk.astype(cdt)

    alpha_i = jnp.asarray(alpha[i], dtype=jnp.float32).reshape(1)

    # Tile the hid output dimension; trivially 1 tile at small hid, and bounds
    # per-step VMEM for large hid (v7x 64 MiB budget).
    TN = min(Hp, 512)
    grid = (Hp // TN,)

    out = pl.pallas_call(
        rnncell2_kernel,
        out_shape=jax.ShapeDtypeStruct((Bp, Hp), jnp.float32),
        grid=grid,
        in_specs=[
            pl.BlockSpec(memory_space=pltpu.MemorySpace.SMEM),   # alpha[i]
            pl.BlockSpec((Bp, Kp), lambda j: (0, 0)),            # [x, h0] (resident)
            pl.BlockSpec((Kp, TN), lambda j: (0, j)),            # fused weights
            pl.BlockSpec((1, TN), lambda j: (0, j)),             # bias
        ],
        out_specs=pl.BlockSpec((Bp, TN), lambda j: (0, j)),
        compiler_params=pltpu.CompilerParams(
            dimension_semantics=("parallel",)),                  # v7x: 2 TCs split hid tiles
    )(alpha_i, xk, W, params["bias"])

    return out[:B, :hid]


def init_params(key, inp_size, hid_size, slen):
    """Deterministic parameter init mirroring RNNCell2.__init__ shapes."""
    k_u, k_b, k_v, k_a = jax.random.split(key, 4)
    # U: xavier_normal_ on (hid, inp) weight
    std = (2.0 / (inp_size + hid_size)) ** 0.5
    U_w = std * jax.random.normal(k_u, (hid_size, inp_size), dtype=jnp.float32)
    U_b = 0.01 * jax.random.normal(k_b, (hid_size,), dtype=jnp.float32)
    # V: orthogonal via expm of a skew-symmetric matrix (henaff-style _B(_A()))
    M = jax.random.normal(k_v, (hid_size, hid_size), dtype=jnp.float32)
    A = jnp.triu(M, k=1)
    A = A - A.T
    V_w = jax.scipy.linalg.expm(A)
    # alpha ~ U[0, 1) of length slen (torch.rand(slen))
    alpha = jax.random.uniform(k_a, (slen,), dtype=jnp.float32)
    return U_w, U_b, V_w, alpha


def _reference(x, U_w, U_b, V_w, alpha, i=1, hidden=None):
    B = x.shape[0]
    hid = U_w.shape[0]
    if hidden is None:
        hidden = jnp.zeros((B, hid), dtype=jnp.float32)
    h = x @ U_w.T + U_b + hidden @ V_w.T
    return (1.0 - jnp.exp(-alpha[i] * h)) * jnp.tanh(h)


if __name__ == "__main__":
    # small shapes consistent with the module: inp_size=16, hid_size=32, slen=8
    batch, inp_size, hid_size, slen = 2, 16, 32, 8
    key = jax.random.PRNGKey(0)
    k_x, k_p, k_h = jax.random.split(key, 3)

    x = jax.random.normal(k_x, (batch, inp_size), dtype=jnp.float32)
    hidden = jax.random.normal(k_h, (batch, hid_size), dtype=jnp.float32)
    U_w, U_b, V_w, alpha = init_params(k_p, inp_size, hid_size, slen)

    # f32 compute path — hidden=None fast path (no V matmul at all)
    params_f32 = prepare_params(U_w, U_b, V_w, compute_dtype=jnp.float32)
    out0 = jax.block_until_ready(rnncell2_forward(params_f32, x, alpha, i=1))
    ref0 = _reference(x, U_w, U_b, V_w, alpha, i=1)
    assert out0.shape == (batch, hid_size)
    assert jnp.allclose(out0, ref0, atol=1e-5, rtol=1e-5)

    # f32 compute path — explicit hidden (fused single matmul)
    out1 = jax.block_until_ready(
        rnncell2_forward(params_f32, x, alpha, i=1, hidden=hidden))
    ref1 = _reference(x, U_w, U_b, V_w, alpha, i=1, hidden=hidden)
    assert jnp.allclose(out1, ref1, atol=1e-5, rtol=1e-5)

    # bf16 matmul inputs (v6e/v7x MXU path), f32 accumulation + f32 gate
    params_bf16 = prepare_params(U_w, U_b, V_w, compute_dtype=jnp.bfloat16)
    out2 = jax.block_until_ready(
        rnncell2_forward(params_bf16, x, alpha, i=1, hidden=hidden))
    assert jnp.allclose(out2, ref1, atol=5e-2, rtol=5e-2)

    print("KERNEL_OK")
</pallas_src>

<mosaic_0001>
module attributes {stable_mosaic.version = 11 : i64} {
  func.func @rnncell2_kernel(%arg0: i32, %arg1: memref<1xf32, #tpu.memory_space<smem>>, %arg2: memref<8x128xf32, #tpu.memory_space<vmem>>, %arg3: memref<128x128xf32, #tpu.memory_space<vmem>>, %arg4: memref<1x128xf32, #tpu.memory_space<vmem>>, %arg5: memref<8x128xf32, #tpu.memory_space<vmem>>) attributes {dimension_semantics = [#tpu.dimension_semantics<parallel>], iteration_bounds = array<i64: 1>, scalar_prefetch = 0 : i64, scratch_operands = 0 : i64, tpu.core_type = #tpu.core_type<tc>, window_params = [{transform_indices = @transform_0, window_bounds = array<i64: 1>}, {pipeline_mode = #tpu.pipeline_mode<synchronous>, transform_indices = @transform_1, window_bounds = array<i64: 8, 128>}, {transform_indices = @transform_2, window_bounds = array<i64: 128, 128>}, {transform_indices = @transform_3, window_bounds = array<i64: 1, 128>}, {transform_indices = @transform_4, window_bounds = array<i64: 8, 128>}]} {
    %c0 = arith.constant 0 : index
    %c0_0 = arith.constant 0 : index
    %0 = vector.load %arg2[%c0, %c0_0] : memref<8x128xf32, #tpu.memory_space<vmem>>, vector<8x128xf32>
    %c0_1 = arith.constant 0 : index
    %c0_2 = arith.constant 0 : index
    %1 = vector.load %arg3[%c0_1, %c0_2] : memref<128x128xf32, #tpu.memory_space<vmem>>, vector<128x128xf32>
    %cst = arith.constant dense<0.000000e+00> : vector<8x128xf32>
    %2 = tpu.matmul %0, %1, %cst {dimension_numbers = #tpu.dot_dimension_numbers<[1], [0], [0], [1], [0, 0, 1, 1], [], []>} : vector<8x128xf32>, vector<128x128xf32>, vector<8x128xf32> -> vector<8x128xf32>
    %c0_3 = arith.constant 0 : index
    %c0_4 = arith.constant 0 : index
    %3 = vector.load %arg4[%c0_3, %c0_4] : memref<1x128xf32, #tpu.memory_space<vmem>>, vector<1x128xf32>
    %4 = vector.broadcast %3 : vector<1x128xf32> to vector<8x128xf32>
    %5 = arith.addf %2, %4 : vector<8x128xf32>
    %c0_5 = arith.constant 0 : index
    %6 = memref.load %arg1[%c0_5] : memref<1xf32, #tpu.memory_space<smem>>
    %cst_6 = arith.constant 0.000000e+00 : f32
    %7 = arith.subf %cst_6, %6 : f32
    %8 = vector.broadcast %7 : f32 to vector<8x128xf32>
    %9 = arith.mulf %8, %5 : vector<8x128xf32>
    %10 = math.exp %9 : vector<8x128xf32>
    %cst_7 = arith.constant 1.000000e+00 : f32
    %11 = vector.broadcast %cst_7 : f32 to vector<8x128xf32>
    %12 = arith.subf %11, %10 : vector<8x128xf32>
    %13 = math.tanh %5 : vector<8x128xf32>
    %14 = arith.mulf %12, %13 : vector<8x128xf32>
    %c0_8 = arith.constant 0 : index
    %c0_9 = arith.constant 0 : index
    %15 = vector.load %arg5[%c0_8, %c0_9] : memref<8x128xf32, #tpu.memory_space<vmem>>, vector<8x128xf32>
    tpu.vector_store %arg5[%c0_8, %c0_9], %14 {strides = array<i32>} : memref<8x128xf32, #tpu.memory_space<vmem>>, vector<8x128xf32>,
    return
  }
  func.func @transform_0(%arg0: i32) -> i32 {
    %c0_i32 = arith.constant 0 : i32
    %c0_i32_0 = arith.constant 0 : i32
    return %c0_i32 : i32
  }
  func.func @transform_1(%arg0: i32) -> (i32, i32) {
    %c0_i32 = arith.constant 0 : i32
    %c0_i32_0 = arith.constant 0 : i32
    %c0_i32_1 = arith.constant 0 : i32
    return %c0_i32, %c0_i32_0 : i32, i32
  }
  func.func @transform_2(%arg0: i32) -> (i32, i32) {
    %c0_i32 = arith.constant 0 : i32
    %c0_i32_0 = arith.constant 0 : i32
    return %c0_i32, %arg0 : i32, i32
  }
  func.func @transform_3(%arg0: i32) -> (i32, i32) {
    %c0_i32 = arith.constant 0 : i32
    %c0_i32_0 = arith.constant 0 : i32
    return %c0_i32, %arg0 : i32, i32
  }
  func.func @transform_4(%arg0: i32) -> (i32, i32) {
    %c0_i32 = arith.constant 0 : i32
    %c0_i32_0 = arith.constant 0 : i32
    return %c0_i32, %arg0 : i32, i32
  }
}

</mosaic_0001>

<bundles_post_ra>
// kernel: tpu_custom_call.1
= control target key start
LH: loop header
LB: loop body
LE: loop exit
PB: predicated region body
PF: predicated region fallthrough
CT: control target
= control target key end

     0   :  { %10 = vsyncpa [#allocation4], 0  ;;  %s251_s0 = inlined_call_operand.<no memory space> [shape: f32[1], index: 0, kind: input, shape index: {}]   ;;  %s252_s1 = inlined_call_operand.hbm [shape: f32[8,128], index: 1, kind: input, shape index: {}]   ;;  %s253_s2 = inlined_call_operand.hbm [shape: f32[128,128], index: 2, kind: input, shape index: {}]   ;;  %s254_s3 = inlined_call_operand.vmem [shape: f32[1,128], index: 3, kind: input, shape index: {}]   ;;  %s255_s4 = inlined_call_operand.hbm [shape: f32[8,128], index: 4, kind: output, shape index: {}]  }
   0x1   :  { %11 = vsyncpa [#allocation7], 0 }
   0x2   :  { %12 = vsyncpa [#allocation5], 0  ;;  %s20_s17 = sshll.u32 %s252_s1, 4  ;;  %s206_s18 = smov [#allocation3]   ;;  %s21_s17 = int_to_ptr.hbm [resolvable:$true] %s20_s17 }
   0x3   :  { %s22_s19 = sshll.u32 %s206_s18, 4  ;;  %s30_s22 = sshll.u32 %s253_s2, 4  ;;  %s23_s19 = int_to_ptr.vmem [resolvable:$true] %s22_s19  ;;  %s31_s22 = int_to_ptr.hbm [resolvable:$true] %s30_s22 }
   0x4   :  { %25 = dma.hbm_to_vmem [thread:$0]  %s21_s17, 128, %s23_s19, [#allocation4]  }
   0x5   :  { %s207_s23 = smov [#allocation6]   ;;  %s208_s25 = smov 128  }
   0x6   :  { %s32_s24 = sshll.u32 %s207_s23, 4  ;;  %s209_s26 = smov 8   ;;  %s33_s24 = int_to_ptr.vmem [resolvable:$true] %s32_s24 }
   0x7   :  { %38 = dma.hbm_to_vmem [thread:$0]  %s31_s22, 2048, %s33_s24, [#allocation7], %s208_s25, %s208_s25, %s209_s26  }
   0x8   :  { %200 = dma.done.wait [#allocation4], 128  }
   0x9   :  { %201 = vsyncadd [#allocation4], 4294967168 }
   0xa   :  { %202 = dma.done.wait [#allocation7], 2048  }
   0xb   :  { %203 = vsyncadd [#allocation7], 4294965248  ;;  %v65_v0 = vld [vmem:[#allocation6 + $0x78] sm:$0xff]  ;;  %v64_v1 = vld [vmem:[#allocation6 + $0x70] sm:$0xff]  ;;  %s91_s27 = ssub.f32 0.0, %s251_s0  ;;  %s210_s30 = smov [#allocation8]  }
   0xc   :  { %70 = vmatpush.msra.mxu0 %v65_v0  ;;  %v63_v2 = vld [vmem:[#allocation6 + $0x68] sm:$0xff]  ;;  %v62_v3 = vld [vmem:[#allocation6 + $0x60] sm:$0xff]  ;;  %v61_v4 = vld [vmem:[#allocation6 + $0x58] sm:$0xff]  ;;  %s105_s5 = sshll.u32 %s210_s30, 4  ;;  %s107_s8 = sshll.u32 %s255_s4, 4  ;;  %s106_s5 = int_to_ptr.vmem [resolvable:$true] %s105_s5  ;;  %s108_s8 = int_to_ptr.hbm [resolvable:$true] %s107_s8 }
   0xd   :  { %v60_v5 = vld [vmem:[#allocation6 + $0x50] sm:$0xff]  ;;  %v59_v6 = vld [vmem:[#allocation6 + $0x48] sm:$0xff]  ;;  %v58_v7 = vld [vmem:[#allocation6 + $0x40] sm:$0xff]  ;;  %v92_v19 = vstv %s91_s27 }
   0xe   :  { %71 = vmatpush.msra.mxu0 %v64_v1  ;;  %v57_v8 = vld [vmem:[#allocation6 + $0x38] sm:$0xff]  ;;  %v56_v9 = vld [vmem:[#allocation6 + $0x30] sm:$0xff]  ;;  %v55_v10 = vld [vmem:[#allocation6 + $0x28] sm:$0xff] }
   0xf   :  { %v54_v11 = vld [vmem:[#allocation6 + $0x20] sm:$0xff]  ;;  %v53_v12 = vld [vmem:[#allocation6 + $0x18] sm:$0xff]  ;;  %v52_v13 = vld [vmem:[#allocation6 + $0x10] sm:$0xff] }
  0x10   :  { %72 = vmatpush.msra.mxu0 %v63_v2  ;;  %v51_v14 = vld [vmem:[#allocation6 + $0x8] sm:$0xff]  ;;  %v50_v15 = vld [vmem:[#allocation6] sm:$0xff]  ;;  %v49_v16 = vld [vmem:[#allocation3] sm:$0xff] }
  0x11   :  { %v123_v17 = vld [vmem:[%s254_s3] ss:$0 sm:$0xff] }
  0x12   :  { %73 = vmatpush.msra.mxu0 %v62_v3 }
  0x14   :  { %74 = vmatpush.msra.mxu0 %v61_v4 }
  0x16   :  { %75 = vmatpush.msra.mxu0 %v60_v5 }
  0x18   :  { %76 = vmatpush.msra.mxu0 %v59_v6 }
  0x1a   :  { %77 = vmatpush.msra.mxu0 %v58_v7 }
  0x1c   :  { %78 = vmatpush.msra.mxu0 %v57_v8 }
  0x1e   :  { %79 = vmatpush.msra.mxu0 %v56_v9 }
  0x20   :  { %80 = vmatpush.msra.mxu0 %v55_v10 }
  0x22   :  { %81 = vmatpush.msra.mxu0 %v54_v11 }
  0x24   :  { %82 = vmatpush.msra.mxu0 %v53_v12 }
  0x26   :  { %83 = vmatpush.msra.mxu0 %v52_v13 }
  0x28   :  { %84 = vmatpush.msra.mxu0 %v51_v14 }
  0x2a   :  { %85 = vmatpush.msra.mxu0 %v50_v15 }
  0x2b   :  { %86 = vmatmul.f32.vlgmr.msra.gmra.mxu0 %v49_v16 }
  0xa8   :  { %v87_v18 = vpop.f32.mrf.mxu0 }
  0xa9   :  { %v88_v20 = vadd.f32 %v123_v17, %v87_v18 }
  0xab   :  { %v93_v21 = vmul.f32 %v92_v19, %v88_v20 }
  0xad   :  { %v94_v22 = vmul.f32 1.442695, %v93_v21 }
  0xaf   :  { %124 = vpow2.f32 %v94_v22 }
  0xb0   :  { %126 = vtanh.f32 %v88_v20 }
  0xb5   :  { %v125_v23 = vpop.eup %124 }
  0xb6   :  { %v96_v24 = vsub.f32 1.0, %v125_v23  ;;  %v127_v25 = vpop.eup %126 }
  0xb8   :  { %v98_v26 = vmul.f32 %v127_v25, %v96_v24 }
  0xba   :  { %99 = vst [vmem:[#allocation8] sm:$0xff] %v98_v26 }
  0xbb   :  { %110 = dma.vmem_to_hbm [thread:$0]  %s106_s5, 128, %s108_s8, [#allocation5]  }
  0xbc   :  { %204 = dma.done.wait [#allocation5], 128  }
  0xbd   :  { %205 = vsyncadd [#allocation5], 4294967168 }
  0xbe   :  { %115 = vsyncpa [#allocation4], 1 }
  0xbf   :  { %116 = vsyncpa [#allocation7], 1 }
  0xc0   :  { %117 = vsyncpa [#allocation5], 1 }

</bundles_post_ra>
